<compile_context>
chip_gen: v7x
topology: tpu7x:2x2x1
jax: 0.10.0
libtpu: 0.0.40
codegen_flags: <defaults>
</compile_context>

<pallas_src>
import functools

import jax
import jax.numpy as jnp
from jax.experimental import pallas as pl
from jax.experimental.pallas import tpu as pltpu

IN_FEATURES = 2
HIDDEN = 10
LANE = 128
ROWS_PER_BLOCK = 512  # 512 sublane rows * 128 lanes = 65536 samples per block


def _round_up(n, m):
    return ((n + m - 1) // m) * m


def simple_nn_kernel(x_ref, w1_ref, b1_ref, w2_ref, b2_ref, o_ref):
    # x_ref: (2, rows_blk, 128) in VMEM (batch on sublane x lane, fully dense).
    # w1_ref (2,10), b1_ref (10,), w2_ref (10,), b2_ref (1,): f32 scalars in SMEM.
    x0 = x_ref[0]                      # (rows_blk, 128) — feature 0 for the block
    x1 = x_ref[1]                      # (rows_blk, 128) — feature 1 for the block

    # Layer-2 accumulator, seeded with its bias (scalar SMEM -> vreg splat).
    y = jnp.full_like(x0, 0.0) + b2_ref[0]

    # Fully unrolled over the 10 hidden units: pure VPU, scalar ops stay on the
    # scalar unit, ReLU is a vmax, and the accumulate chain keeps one live vreg.
    for j in range(HIDDEN):
        h = w1_ref[0, j] * x0 + w1_ref[1, j] * x1 + b1_ref[j]   # layer1 row j
        h = jnp.maximum(h, 0.0)                                 # ReLU
        y = y + w2_ref[j] * h                                   # layer2 accum

    o_ref[...] = jax.nn.sigmoid(y)                              # Sigmoid (EUP exp)


@functools.partial(jax.jit, static_argnames=("rows_per_block",))
def simple_nn_forward(x, w1, b1, w2, b2, *, rows_per_block=ROWS_PER_BLOCK):
    """x: (B, 2) -> (B, 1), matching PyTorch SimpleNN.forward.

    Weights use the (in_features, out_features) convention:
      w1: (2, 10), b1: (10,), w2: (10, 1), b2: (1,)
    """
    batch = x.shape[0]
    x = x.astype(jnp.float32)

    # Batch onto the lane axis: (B, 2) -> (2, B) -> (2, rows, 128).
    rows = max(1, -(-batch // LANE))
    if rows <= rows_per_block:
        rows_blk = rows               # single block: block dim == full dim is legal
        padded_rows = rows
    else:
        rows_blk = rows_per_block     # multiple of 8 -> satisfies (8, 128) tiling
        padded_rows = _round_up(rows, rows_blk)
    padded_batch = padded_rows * LANE

    xt = jnp.pad(x.T, ((0, 0), (0, padded_batch - batch)))
    x3 = xt.reshape(IN_FEATURES, padded_rows, LANE)

    grid = (padded_rows // rows_blk,)
    smem = pl.BlockSpec(memory_space=pltpu.MemorySpace.SMEM)

    out2d = pl.pallas_call(
        simple_nn_kernel,
        out_shape=jax.ShapeDtypeStruct((padded_rows, LANE), jnp.float32),
        grid=grid,
        in_specs=[
            pl.BlockSpec((IN_FEATURES, rows_blk, LANE), lambda i: (0, i, 0)),
            smem,   # w1 (2, 10)
            smem,   # b1 (10,)
            smem,   # w2 flattened (10,)
            smem,   # b2 (1,)
        ],
        out_specs=pl.BlockSpec((rows_blk, LANE), lambda i: (i, 0)),
        compiler_params=pltpu.CompilerParams(
            dimension_semantics=("parallel",)),
    )(
        x3,
        w1.astype(jnp.float32),
        b1.astype(jnp.float32),
        w2.astype(jnp.float32).reshape(-1),
        b2.astype(jnp.float32),
    )

    # Drop padding samples, restore PyTorch's (B, 1) layout.
    return out2d.reshape(-1)[:batch].reshape(batch, 1)


def init_params(key):
    """Deterministic parameter init matching the PyTorch module's shapes."""
    k1, k2, k3, k4 = jax.random.split(key, 4)
    in1, out1 = IN_FEATURES, HIDDEN
    in2, out2 = HIDDEN, 1
    # PyTorch Linear default: U(-1/sqrt(fan_in), 1/sqrt(fan_in))
    bound1 = 1.0 / jnp.sqrt(in1)
    bound2 = 1.0 / jnp.sqrt(in2)
    w1 = jax.random.uniform(k1, (in1, out1), jnp.float32, -bound1, bound1)
    b1 = jax.random.uniform(k2, (out1,), jnp.float32, -bound1, bound1)
    w2 = jax.random.uniform(k3, (in2, out2), jnp.float32, -bound2, bound2)
    b2 = jax.random.uniform(k4, (out2,), jnp.float32, -bound2, bound2)
    return w1, b1, w2, b2


def reference_forward(x, w1, b1, w2, b2):
    h = jnp.maximum(x @ w1 + b1, 0.0)
    return jax.nn.sigmoid(h @ w2 + b2)


if __name__ == "__main__":
    key = jax.random.PRNGKey(0)
    k_params, k_x1, k_x2 = jax.random.split(key, 3)
    w1, b1, w2, b2 = init_params(k_params)

    # Small primary check (batch=8, exercises lane padding + output slice).
    batch = 8
    x = jax.random.normal(k_x1, (batch, IN_FEATURES), jnp.float32)
    out = jax.block_until_ready(simple_nn_forward(x, w1, b1, w2, b2))
    ref = reference_forward(x, w1, b1, w2, b2)
    assert out.shape == (batch, 1)
    assert jnp.allclose(out, ref, atol=1e-5, rtol=1e-5), (
        f"max abs err {jnp.max(jnp.abs(out - ref))}")

    # Secondary check with a non-multiple-of-128 batch spanning several rows.
    batch2 = 1000
    x2 = jax.random.normal(k_x2, (batch2, IN_FEATURES), jnp.float32)
    out2 = jax.block_until_ready(simple_nn_forward(x2, w1, b1, w2, b2))
    ref2 = reference_forward(x2, w1, b1, w2, b2)
    assert out2.shape == (batch2, 1)
    assert jnp.allclose(out2, ref2, atol=1e-5, rtol=1e-5), (
        f"max abs err {jnp.max(jnp.abs(out2 - ref2))}")

    print("KERNEL_OK")
</pallas_src>

<mosaic_0001>
module attributes {stable_mosaic.version = 11 : i64} {
  func.func @simple_nn_kernel(%arg0: i32, %arg1: memref<2x1x128xf32, #tpu.memory_space<vmem>>, %arg2: memref<2x10xf32, #tpu.memory_space<smem>>, %arg3: memref<10xf32, #tpu.memory_space<smem>>, %arg4: memref<10xf32, #tpu.memory_space<smem>>, %arg5: memref<1xf32, #tpu.memory_space<smem>>, %arg6: memref<1x128xf32, #tpu.memory_space<vmem>>) attributes {dimension_semantics = [#tpu.dimension_semantics<parallel>], iteration_bounds = array<i64: 1>, scalar_prefetch = 0 : i64, scratch_operands = 0 : i64, tpu.core_type = #tpu.core_type<tc>, window_params = [{transform_indices = @transform_0, window_bounds = array<i64: 2, 1, 128>}, {transform_indices = @transform_1, window_bounds = array<i64: 2, 10>}, {transform_indices = @transform_2, window_bounds = array<i64: 10>}, {transform_indices = @transform_3, window_bounds = array<i64: 10>}, {transform_indices = @transform_4, window_bounds = array<i64: 1>}, {transform_indices = @transform_5, window_bounds = array<i64: 1, 128>}]} {
    %c0 = arith.constant 0 : index
    %c0_0 = arith.constant 0 : index
    %c0_1 = arith.constant 0 : index
    %0 = vector.load %arg1[%c0, %c0_0, %c0_1] : memref<2x1x128xf32, #tpu.memory_space<vmem>>, vector<1x1x128xf32>
    %1 = vector.shape_cast %0 : vector<1x1x128xf32> to vector<1x128xf32>
    %c1 = arith.constant 1 : index
    %c0_2 = arith.constant 0 : index
    %c0_3 = arith.constant 0 : index
    %2 = vector.load %arg1[%c1, %c0_2, %c0_3] : memref<2x1x128xf32, #tpu.memory_space<vmem>>, vector<1x1x128xf32>
    %3 = vector.shape_cast %2 : vector<1x1x128xf32> to vector<1x128xf32>
    %cst = arith.constant 0.000000e+00 : f32
    %4 = vector.broadcast %cst : f32 to vector<1x128xf32>
    %c0_4 = arith.constant 0 : index
    %5 = memref.load %arg5[%c0_4] : memref<1xf32, #tpu.memory_space<smem>>
    %6 = vector.broadcast %5 : f32 to vector<1x128xf32>
    %7 = arith.addf %4, %6 : vector<1x128xf32>
    %c0_5 = arith.constant 0 : index
    %c0_6 = arith.constant 0 : index
    %8 = memref.load %arg2[%c0_5, %c0_6] : memref<2x10xf32, #tpu.memory_space<smem>>
    %9 = vector.broadcast %8 : f32 to vector<1x128xf32>
    %10 = arith.mulf %9, %1 : vector<1x128xf32>
    %c1_7 = arith.constant 1 : index
    %c0_8 = arith.constant 0 : index
    %11 = memref.load %arg2[%c1_7, %c0_8] : memref<2x10xf32, #tpu.memory_space<smem>>
    %12 = vector.broadcast %11 : f32 to vector<1x128xf32>
    %13 = arith.mulf %12, %3 : vector<1x128xf32>
    %14 = arith.addf %10, %13 : vector<1x128xf32>
    %c0_9 = arith.constant 0 : index
    %15 = memref.load %arg3[%c0_9] : memref<10xf32, #tpu.memory_space<smem>>
    %16 = vector.broadcast %15 : f32 to vector<1x128xf32>
    %17 = arith.addf %14, %16 : vector<1x128xf32>
    %cst_10 = arith.constant 0.000000e+00 : f32
    %18 = vector.broadcast %cst_10 : f32 to vector<1x128xf32>
    %19 = arith.maximumf %17, %18 : vector<1x128xf32>
    %c0_11 = arith.constant 0 : index
    %20 = memref.load %arg4[%c0_11] : memref<10xf32, #tpu.memory_space<smem>>
    %21 = vector.broadcast %20 : f32 to vector<1x128xf32>
    %22 = arith.mulf %21, %19 : vector<1x128xf32>
    %23 = arith.addf %7, %22 : vector<1x128xf32>
    %c0_12 = arith.constant 0 : index
    %c1_13 = arith.constant 1 : index
    %24 = memref.load %arg2[%c0_12, %c1_13] : memref<2x10xf32, #tpu.memory_space<smem>>
    %25 = vector.broadcast %24 : f32 to vector<1x128xf32>
    %26 = arith.mulf %25, %1 : vector<1x128xf32>
    %c1_14 = arith.constant 1 : index
    %c1_15 = arith.constant 1 : index
    %27 = memref.load %arg2[%c1_14, %c1_15] : memref<2x10xf32, #tpu.memory_space<smem>>
    %28 = vector.broadcast %27 : f32 to vector<1x128xf32>
    %29 = arith.mulf %28, %3 : vector<1x128xf32>
    %30 = arith.addf %26, %29 : vector<1x128xf32>
    %c1_16 = arith.constant 1 : index
    %31 = memref.load %arg3[%c1_16] : memref<10xf32, #tpu.memory_space<smem>>
    %32 = vector.broadcast %31 : f32 to vector<1x128xf32>
    %33 = arith.addf %30, %32 : vector<1x128xf32>
    %cst_17 = arith.constant 0.000000e+00 : f32
    %34 = vector.broadcast %cst_17 : f32 to vector<1x128xf32>
    %35 = arith.maximumf %33, %34 : vector<1x128xf32>
    %c1_18 = arith.constant 1 : index
    %36 = memref.load %arg4[%c1_18] : memref<10xf32, #tpu.memory_space<smem>>
    %37 = vector.broadcast %36 : f32 to vector<1x128xf32>
    %38 = arith.mulf %37, %35 : vector<1x128xf32>
    %39 = arith.addf %23, %38 : vector<1x128xf32>
    %c0_19 = arith.constant 0 : index
    %c2 = arith.constant 2 : index
    %40 = memref.load %arg2[%c0_19, %c2] : memref<2x10xf32, #tpu.memory_space<smem>>
    %41 = vector.broadcast %40 : f32 to vector<1x128xf32>
    %42 = arith.mulf %41, %1 : vector<1x128xf32>
    %c1_20 = arith.constant 1 : index
    %c2_21 = arith.constant 2 : index
    %43 = memref.load %arg2[%c1_20, %c2_21] : memref<2x10xf32, #tpu.memory_space<smem>>
    %44 = vector.broadcast %43 : f32 to vector<1x128xf32>
    %45 = arith.mulf %44, %3 : vector<1x128xf32>
    %46 = arith.addf %42, %45 : vector<1x128xf32>
    %c2_22 = arith.constant 2 : index
    %47 = memref.load %arg3[%c2_22] : memref<10xf32, #tpu.memory_space<smem>>
    %48 = vector.broadcast %47 : f32 to vector<1x128xf32>
    %49 = arith.addf %46, %48 : vector<1x128xf32>
    %cst_23 = arith.constant 0.000000e+00 : f32
    %50 = vector.broadcast %cst_23 : f32 to vector<1x128xf32>
    %51 = arith.maximumf %49, %50 : vector<1x128xf32>
    %c2_24 = arith.constant 2 : index
    %52 = memref.load %arg4[%c2_24] : memref<10xf32, #tpu.memory_space<smem>>
    %53 = vector.broadcast %52 : f32 to vector<1x128xf32>
    %54 = arith.mulf %53, %51 : vector<1x128xf32>
    %55 = arith.addf %39, %54 : vector<1x128xf32>
    %c0_25 = arith.constant 0 : index
    %c3 = arith.constant 3 : index
    %56 = memref.load %arg2[%c0_25, %c3] : memref<2x10xf32, #tpu.memory_space<smem>>
    %57 = vector.broadcast %56 : f32 to vector<1x128xf32>
    %58 = arith.mulf %57, %1 : vector<1x128xf32>
    %c1_26 = arith.constant 1 : index
    %c3_27 = arith.constant 3 : index
    %59 = memref.load %arg2[%c1_26, %c3_27] : memref<2x10xf32, #tpu.memory_space<smem>>
    %60 = vector.broadcast %59 : f32 to vector<1x128xf32>
    %61 = arith.mulf %60, %3 : vector<1x128xf32>
    %62 = arith.addf %58, %61 : vector<1x128xf32>
    %c3_28 = arith.constant 3 : index
    %63 = memref.load %arg3[%c3_28] : memref<10xf32, #tpu.memory_space<smem>>
    %64 = vector.broadcast %63 : f32 to vector<1x128xf32>
    %65 = arith.addf %62, %64 : vector<1x128xf32>
    %cst_29 = arith.constant 0.000000e+00 : f32
    %66 = vector.broadcast %cst_29 : f32 to vector<1x128xf32>
    %67 = arith.maximumf %65, %66 : vector<1x128xf32>
    %c3_30 = arith.constant 3 : index
    %68 = memref.load %arg4[%c3_30] : memref<10xf32, #tpu.memory_space<smem>>
    %69 = vector.broadcast %68 : f32 to vector<1x128xf32>
    %70 = arith.mulf %69, %67 : vector<1x128xf32>
    %71 = arith.addf %55, %70 : vector<1x128xf32>
    %c0_31 = arith.constant 0 : index
    %c4 = arith.constant 4 : index
    %72 = memref.load %arg2[%c0_31, %c4] : memref<2x10xf32, #tpu.memory_space<smem>>
    %73 = vector.broadcast %72 : f32 to vector<1x128xf32>
    %74 = arith.mulf %73, %1 : vector<1x128xf32>
    %c1_32 = arith.constant 1 : index
    %c4_33 = arith.constant 4 : index
    %75 = memref.load %arg2[%c1_32, %c4_33] : memref<2x10xf32, #tpu.memory_space<smem>>
    %76 = vector.broadcast %75 : f32 to vector<1x128xf32>
    %77 = arith.mulf %76, %3 : vector<1x128xf32>
    %78 = arith.addf %74, %77 : vector<1x128xf32>
    %c4_34 = arith.constant 4 : index
    %79 = memref.load %arg3[%c4_34] : memref<10xf32, #tpu.memory_space<smem>>
    %80 = vector.broadcast %79 : f32 to vector<1x128xf32>
    %81 = arith.addf %78, %80 : vector<1x128xf32>
    %cst_35 = arith.constant 0.000000e+00 : f32
    %82 = vector.broadcast %cst_35 : f32 to vector<1x128xf32>
    %83 = arith.maximumf %81, %82 : vector<1x128xf32>
    %c4_36 = arith.constant 4 : index
    %84 = memref.load %arg4[%c4_36] : memref<10xf32, #tpu.memory_space<smem>>
    %85 = vector.broadcast %84 : f32 to vector<1x128xf32>
    %86 = arith.mulf %85, %83 : vector<1x128xf32>
    %87 = arith.addf %71, %86 : vector<1x128xf32>
    %c0_37 = arith.constant 0 : index
    %c5 = arith.constant 5 : index
    %88 = memref.load %arg2[%c0_37, %c5] : memref<2x10xf32, #tpu.memory_space<smem>>
    %89 = vector.broadcast %88 : f32 to vector<1x128xf32>
    %90 = arith.mulf %89, %1 : vector<1x128xf32>
    %c1_38 = arith.constant 1 : index
    %c5_39 = arith.constant 5 : index
    %91 = memref.load %arg2[%c1_38, %c5_39] : memref<2x10xf32, #tpu.memory_space<smem>>
    %92 = vector.broadcast %91 : f32 to vector<1x128xf32>
    %93 = arith.mulf %92, %3 : vector<1x128xf32>
    %94 = arith.addf %90, %93 : vector<1x128xf32>
    %c5_40 = arith.constant 5 : index
    %95 = memref.load %arg3[%c5_40] : memref<10xf32, #tpu.memory_space<smem>>
    %96 = vector.broadcast %95 : f32 to vector<1x128xf32>
    %97 = arith.addf %94, %96 : vector<1x128xf32>
    %cst_41 = arith.constant 0.000000e+00 : f32
    %98 = vector.broadcast %cst_41 : f32 to vector<1x128xf32>
    %99 = arith.maximumf %97, %98 : vector<1x128xf32>
    %c5_42 = arith.constant 5 : index
    %100 = memref.load %arg4[%c5_42] : memref<10xf32, #tpu.memory_space<smem>>
    %101 = vector.broadcast %100 : f32 to vector<1x128xf32>
    %102 = arith.mulf %101, %99 : vector<1x128xf32>
    %103 = arith.addf %87, %102 : vector<1x128xf32>
    %c0_43 = arith.constant 0 : index
    %c6 = arith.constant 6 : index
    %104 = memref.load %arg2[%c0_43, %c6] : memref<2x10xf32, #tpu.memory_space<smem>>
    %105 = vector.broadcast %104 : f32 to vector<1x128xf32>
    %106 = arith.mulf %105, %1 : vector<1x128xf32>
    %c1_44 = arith.constant 1 : index
    %c6_45 = arith.constant 6 : index
    %107 = memref.load %arg2[%c1_44, %c6_45] : memref<2x10xf32, #tpu.memory_space<smem>>
    %108 = vector.broadcast %107 : f32 to vector<1x128xf32>
    %109 = arith.mulf %108, %3 : vector<1x128xf32>
    %110 = arith.addf %106, %109 : vector<1x128xf32>
    %c6_46 = arith.constant 6 : index
    %111 = memref.load %arg3[%c6_46] : memref<10xf32, #tpu.memory_space<smem>>
    %112 = vector.broadcast %111 : f32 to vector<1x128xf32>
    %113 = arith.addf %110, %112 : vector<1x128xf32>
    %cst_47 = arith.constant 0.000000e+00 : f32
    %114 = vector.broadcast %cst_47 : f32 to vector<1x128xf32>
    %115 = arith.maximumf %113, %114 : vector<1x128xf32>
    %c6_48 = arith.constant 6 : index
    %116 = memref.load %arg4[%c6_48] : memref<10xf32, #tpu.memory_space<smem>>
    %117 = vector.broadcast %116 : f32 to vector<1x128xf32>
    %118 = arith.mulf %117, %115 : vector<1x128xf32>
    %119 = arith.addf %103, %118 : vector<1x128xf32>
    %c0_49 = arith.constant 0 : index
    %c7 = arith.constant 7 : index
    %120 = memref.load %arg2[%c0_49, %c7] : memref<2x10xf32, #tpu.memory_space<smem>>
    %121 = vector.broadcast %120 : f32 to vector<1x128xf32>
    %122 = arith.mulf %121, %1 : vector<1x128xf32>
    %c1_50 = arith.constant 1 : index
    %c7_51 = arith.constant 7 : index
    %123 = memref.load %arg2[%c1_50, %c7_51] : memref<2x10xf32, #tpu.memory_space<smem>>
    %124 = vector.broadcast %123 : f32 to vector<1x128xf32>
    %125 = arith.mulf %124, %3 : vector<1x128xf32>
    %126 = arith.addf %122, %125 : vector<1x128xf32>
    %c7_52 = arith.constant 7 : index
    %127 = memref.load %arg3[%c7_52] : memref<10xf32, #tpu.memory_space<smem>>
    %128 = vector.broadcast %127 : f32 to vector<1x128xf32>
    %129 = arith.addf %126, %128 : vector<1x128xf32>
    %cst_53 = arith.constant 0.000000e+00 : f32
    %130 = vector.broadcast %cst_53 : f32 to vector<1x128xf32>
    %131 = arith.maximumf %129, %130 : vector<1x128xf32>
    %c7_54 = arith.constant 7 : index
    %132 = memref.load %arg4[%c7_54] : memref<10xf32, #tpu.memory_space<smem>>
    %133 = vector.broadcast %132 : f32 to vector<1x128xf32>
    %134 = arith.mulf %133, %131 : vector<1x128xf32>
    %135 = arith.addf %119, %134 : vector<1x128xf32>
    %c0_55 = arith.constant 0 : index
    %c8 = arith.constant 8 : index
    %136 = memref.load %arg2[%c0_55, %c8] : memref<2x10xf32, #tpu.memory_space<smem>>
    %137 = vector.broadcast %136 : f32 to vector<1x128xf32>
    %138 = arith.mulf %137, %1 : vector<1x128xf32>
    %c1_56 = arith.constant 1 : index
    %c8_57 = arith.constant 8 : index
    %139 = memref.load %arg2[%c1_56, %c8_57] : memref<2x10xf32, #tpu.memory_space<smem>>
    %140 = vector.broadcast %139 : f32 to vector<1x128xf32>
    %141 = arith.mulf %140, %3 : vector<1x128xf32>
    %142 = arith.addf %138, %141 : vector<1x128xf32>
    %c8_58 = arith.constant 8 : index
    %143 = memref.load %arg3[%c8_58] : memref<10xf32, #tpu.memory_space<smem>>
    %144 = vector.broadcast %143 : f32 to vector<1x128xf32>
    %145 = arith.addf %142, %144 : vector<1x128xf32>
    %cst_59 = arith.constant 0.000000e+00 : f32
    %146 = vector.broadcast %cst_59 : f32 to vector<1x128xf32>
    %147 = arith.maximumf %145, %146 : vector<1x128xf32>
    %c8_60 = arith.constant 8 : index
    %148 = memref.load %arg4[%c8_60] : memref<10xf32, #tpu.memory_space<smem>>
    %149 = vector.broadcast %148 : f32 to vector<1x128xf32>
    %150 = arith.mulf %149, %147 : vector<1x128xf32>
    %151 = arith.addf %135, %150 : vector<1x128xf32>
    %c0_61 = arith.constant 0 : index
    %c9 = arith.constant 9 : index
    %152 = memref.load %arg2[%c0_61, %c9] : memref<2x10xf32, #tpu.memory_space<smem>>
    %153 = vector.broadcast %152 : f32 to vector<1x128xf32>
    %154 = arith.mulf %153, %1 : vector<1x128xf32>
    %c1_62 = arith.constant 1 : index
    %c9_63 = arith.constant 9 : index
    %155 = memref.load %arg2[%c1_62, %c9_63] : memref<2x10xf32, #tpu.memory_space<smem>>
    %156 = vector.broadcast %155 : f32 to vector<1x128xf32>
    %157 = arith.mulf %156, %3 : vector<1x128xf32>
    %158 = arith.addf %154, %157 : vector<1x128xf32>
    %c9_64 = arith.constant 9 : index
    %159 = memref.load %arg3[%c9_64] : memref<10xf32, #tpu.memory_space<smem>>
    %160 = vector.broadcast %159 : f32 to vector<1x128xf32>
    %161 = arith.addf %158, %160 : vector<1x128xf32>
    %cst_65 = arith.constant 0.000000e+00 : f32
    %162 = vector.broadcast %cst_65 : f32 to vector<1x128xf32>
    %163 = arith.maximumf %161, %162 : vector<1x128xf32>
    %c9_66 = arith.constant 9 : index
    %164 = memref.load %arg4[%c9_66] : memref<10xf32, #tpu.memory_space<smem>>
    %165 = vector.broadcast %164 : f32 to vector<1x128xf32>
    %166 = arith.mulf %165, %163 : vector<1x128xf32>
    %167 = arith.addf %151, %166 : vector<1x128xf32>
    %168 = arith.negf %167 : vector<1x128xf32>
    %169 = math.exp %168 : vector<1x128xf32>
    %cst_67 = arith.constant 1.000000e+00 : f32
    %170 = vector.broadcast %cst_67 : f32 to vector<1x128xf32>
    %171 = arith.addf %170, %169 : vector<1x128xf32>
    %172 = arith.divf %170, %171 : vector<1x128xf32>
    %c0_68 = arith.constant 0 : index
    %c0_69 = arith.constant 0 : index
    %173 = vector.load %arg6[%c0_68, %c0_69] : memref<1x128xf32, #tpu.memory_space<vmem>>, vector<1x128xf32>
    tpu.vector_store %arg6[%c0_68, %c0_69], %172 {strides = array<i32>} : memref<1x128xf32, #tpu.memory_space<vmem>>, vector<1x128xf32>,
    return
  }
  func.func @transform_0(%arg0: i32) -> (i32, i32, i32) {
    %c0_i32 = arith.constant 0 : i32
    %c0_i32_0 = arith.constant 0 : i32
    %c0_i32_1 = arith.constant 0 : i32
    return %c0_i32, %arg0, %c0_i32_0 : i32, i32, i32
  }
  func.func @transform_1(%arg0: i32) -> (i32, i32) {
    %c0_i32 = arith.constant 0 : i32
    %c0_i32_0 = arith.constant 0 : i32
    %c0_i32_1 = arith.constant 0 : i32
    return %c0_i32, %c0_i32_0 : i32, i32
  }
  func.func @transform_2(%arg0: i32) -> i32 {
    %c0_i32 = arith.constant 0 : i32
    %c0_i32_0 = arith.constant 0 : i32
    return %c0_i32 : i32
  }
  func.func @transform_3(%arg0: i32) -> i32 {
    %c0_i32 = arith.constant 0 : i32
    %c0_i32_0 = arith.constant 0 : i32
    return %c0_i32 : i32
  }
  func.func @transform_4(%arg0: i32) -> i32 {
    %c0_i32 = arith.constant 0 : i32
    %c0_i32_0 = arith.constant 0 : i32
    return %c0_i32 : i32
  }
  func.func @transform_5(%arg0: i32) -> (i32, i32) {
    %c0_i32 = arith.constant 0 : i32
    %c0_i32_0 = arith.constant 0 : i32
    return %arg0, %c0_i32 : i32, i32
  }
}

</mosaic_0001>

<bundles_post_ra>
// kernel: simple_nn_forward.1
= control target key start
LH: loop header
LB: loop body
LE: loop exit
PB: predicated region body
PF: predicated region fallthrough
CT: control target
= control target key end

     0   :  { %11 = vsyncpa [#allocation4], 0  ;;  %s492_s0 = inlined_call_operand.vmem [shape: f32[2,1,128], index: 0, kind: input, shape index: {}]   ;;  %s493_s1 = inlined_call_operand.vmem [shape: f32[2,10], index: 1, kind: input, shape index: {}]   ;;  %s494_s2 = inlined_call_operand.vmem [shape: f32[10], index: 2, kind: input, shape index: {}]   ;;  %s495_s3 = inlined_call_operand.vmem [shape: f32[10], index: 3, kind: input, shape index: {}]   ;;  %s496_s4 = inlined_call_operand.<no memory space> [shape: f32[1], index: 4, kind: input, shape index: {}]   ;;  %s497_s5 = inlined_call_operand.vmem [shape: f32[1,128], index: 5, kind: output, shape index: {}]  }
   0x1   :  { %12 = vsyncpa [#allocation6], 0  ;;  %s31_s20 = sshll.u32 %s494_s2, 4  ;;  %s21_s23 = sshll.u32 %s493_s1, 4  ;;  %s32_s20 = int_to_ptr.vmem [resolvable:$true] %s31_s20  ;;  %s22_s23 = int_to_ptr.vmem [resolvable:$true] %s21_s23 }
   0x2   :  { %s272_s24 = scalar_lea.vmem %s32_s20, 16  ;;  %p277_p1 = scmp.lt.s32.totalorder %s32_s20, %s32_s20 }
   0x3   :  { %p273_p0 = scmp.ne.s32.totalorder %s32_s20, %s272_s24  ;;  %p278_p2 = scmp.lt.s32.totalorder %s272_s24, %s272_s24 }
   0x5   :  { %p279_p3 = por %p278_p2, %p277_p1 }
   0x7   :  { %p280_p4 = pnand %p279_p3, %p273_p0 }
   0x9   :  { %283 = shalt.err (!%p280_p4)
}
   0xa   :  { %s312_s25 = smov [#allocation5]   ;;  %s284_s26 = scalar_lea.vmem %s22_s23, 32 }
   0xb   :  { %34 = dma.vmem_to_smem %s32_s20, 16, %s312_s25, [#allocation6]  }
   0xc   :  { %p285_p5 = scmp.ne.s32.totalorder %s22_s23, %s284_s26  ;;  %p289_p6 = scmp.lt.s32.totalorder %s22_s23, %s22_s23 }
   0xd   :  { %p290_p7 = scmp.lt.s32.totalorder %s284_s26, %s284_s26 }
   0xf   :  { %p291_p8 = por %p290_p7, %p289_p6 }
  0x11   :  { %p292_p9 = pnand %p291_p8, %p285_p5 }
  0x13   :  { %295 = shalt.err (!%p292_p9)
}
  0x14   :  { %s313_s2 = smov [#allocation3]   ;;  %s41_s28 = sshll.u32 %s495_s3, 4  ;;  %s42_s28 = int_to_ptr.vmem [resolvable:$true] %s41_s28 }
  0x15   :  { %24 = dma.vmem_to_smem %s22_s23, 32, %s313_s2, [#allocation4]  }
  0x16   :  { %s296_s29 = scalar_lea.vmem %s42_s28, 16  ;;  %p301_p11 = scmp.lt.s32.totalorder %s42_s28, %s42_s28 }
  0x17   :  { %p297_p10 = scmp.ne.s32.totalorder %s42_s28, %s296_s29  ;;  %p302_p12 = scmp.lt.s32.totalorder %s296_s29, %s296_s29 }
  0x19   :  { %p303_p13 = por %p302_p12, %p301_p11 }
  0x1b   :  { %p304_p0 = pnand %p303_p13, %p297_p10 }
  0x1d   :  { %307 = shalt.err (!%p304_p0)
}
  0x1e   :  { %s314_s30 = smov [#allocation7]  }
  0x1f   :  { %44 = dma.vmem_to_smem %s42_s28, 16, %s314_s30, [#allocation6]  }
  0x20   :  { %308 = dma.done.wait [#allocation4], 32  }
  0x21   :  { %309 = vsyncadd [#allocation4], 4294967264 }
  0x22   :  { %310 = dma.done.wait [#allocation6], 32  }
  0x23   :  { %311 = vsyncadd [#allocation6], 4294967264 }
  0x24   :  { %56 = sfence }
  0x25   :  { %s63_s6 = sld [smem:[#allocation3]]  ;;  %s228_s9 = sld [smem:[#allocation3 + $0x1]]  ;;  %v363_v0 = vld [vmem:[%s492_s0] sm:$0x1]  ;;  %v370_v1 = vld [vmem:[%s492_s0 + $0x1] sm:$0x1]  ;;  %v61_v10 = vstv %s496_s4 }
  0x26   :  { %s227_s7 = sld [smem:[#allocation3 + $0x80]]  ;;  %s229_s10 = sld [smem:[#allocation3 + $0x81]] }
  0x27   :  { %s354_s8 = sld [smem:[#allocation5]]  ;;  %s358_s11 = sld [smem:[#allocation5 + $0x1]] }
  0x28   :  { %s356_s3 = sld [smem:[#allocation7]]  ;;  %s365_s14 = sld [smem:[#allocation7 + $0x1]] }
  0x29   :  { %s232_s15 = sld [smem:[#allocation3 + $0x2]]  ;;  %s378_s21 = sld [smem:[#allocation3 + $0x3]] }
  0x2a   :  { %s372_s18 = sld [smem:[#allocation3 + $0x82]]  ;;  %s381_s22 = sld [smem:[#allocation3 + $0x83]] }
  0x2b   :  { %s374_s19 = sld [smem:[#allocation5 + $0x2]]  ;;  %v64_v2 = vstv %s63_s6  ;;  %s383_s23 = sld [smem:[#allocation5 + $0x3]]  ;;  %v79_v6 = vstv %s228_s9 }
  0x2c   :  { %s376_s20 = sld [smem:[#allocation7 + $0x2]]  ;;  %v65_v3 = vmul.f32 %v64_v2, %v363_v0  ;;  %v67_v4 = vstv %s227_s7  ;;  %s386_s0 = sld [smem:[#allocation7 + $0x3]]  ;;  %v80_v8 = vmul.f32 %v79_v6, %v363_v0  ;;  %v82_v9 = vstv %s229_s10 }
  0x2d   :  { %v68_v5 = vmul.f32 %v370_v1, %v67_v4  ;;  %s388_s24 = sld [smem:[#allocation3 + $0x4]]  ;;  %v71_v7 = vstv %s354_s8  ;;  %v83_v12 = vmul.f32 %v370_v1, %v82_v9  ;;  %s400_s27 = sld [smem:[#allocation3 + $0x5]]  ;;  %v86_v15 = vstv %s358_s11 }
  0x2e   :  { %s392_s25 = sld [smem:[#allocation3 + $0x84]]  ;;  %v75_v14 = vstv %s356_s3  ;;  %s406_s28 = sld [smem:[#allocation3 + $0x85]]  ;;  %v90_v20 = vstv %s365_s14 }
  0x2f   :  { %s394_s26 = sld [smem:[#allocation5 + $0x4]]  ;;  %v69_v11 = vadd.f32 %v68_v5, %v65_v3  ;;  %v94_v13 = vstv %s232_s15  ;;  %v84_v19 = vadd.f32 %v83_v12, %v80_v8  ;;  %v109_v24 = vstv %s378_s21  ;;  %s416_s29 = sld [smem:[#allocation5 + $0x5]] }
  0x30   :  { %v95_v16 = vmul.f32 %v94_v13, %v363_v0  ;;  %v97_v17 = vstv %s372_s18  ;;  %s410_s4 = sld [smem:[#allocation7 + $0x4]]  ;;  %v112_v25 = vstv %s381_s22  ;;  %s418_s30 = sld [smem:[#allocation3 + $0x6]]  ;;  %v110_v29 = vmul.f32 %v109_v24, %v363_v0 }
  0x31   :  { %v72_v18 = vadd.f32 %v71_v7, %v69_v11  ;;  %v98_v21 = vmul.f32 %v370_v1, %v97_v17  ;;  %v101_v22 = vstv %s374_s19  ;;  %v87_v27 = vadd.f32 %v86_v15, %v84_v19  ;;  %s421_s6 = sld [smem:[#allocation3 + $0x86]]  ;;  %s427_s7 = sld [smem:[#allocation7 + $0x5]] }
  0x32   :  { %v105_v23 = vstv %s376_s20  ;;  %v113_v30 = vmul.f32 %v370_v1, %v112_v25  ;;  %v116_v31 = vstv %s383_s23  ;;  %s429_s8 = sld [smem:[#allocation5 + $0x6]]  ;;  %s432_s3 = sld [smem:[#allocation3 + $0x7]]  ;;  %v120_v39 = vstv %s386_s0 }
  0x33   :  { %v73_v26 = vmax.f32 %v72_v18, 0.0  ;;  %v99_v28 = vadd.f32 %v98_v21, %v95_v16  ;;  %v124_v32 = vstv %s388_s24  ;;  %v88_v35 = vmax.f32 %v87_v27, 0.0  ;;  %s434_s9 = sld [smem:[#allocation3 + $0x87]]  ;;  %s440_s10 = sld [smem:[#allocation7 + $0x6]] }
  0x34   :  { %v127_v33 = vstv %s392_s25  ;;  %v125_v37 = vmul.f32 %v124_v32, %v363_v0  ;;  %v114_v38 = vadd.f32 %v113_v30, %v110_v29  ;;  %v139_v45 = vstv %s400_s27  ;;  %s442_s11 = sld [smem:[#allocation5 + $0x7]]  ;;  %s446_s12 = sld [smem:[#allocation3 + $0x8]] }
  0x35   :  { %v76_v34 = vmul.f32 %v75_v14, %v73_v26  ;;  %v102_v36 = vadd.f32 %v101_v22, %v99_v28  ;;  %v128_v40 = vmul.f32 %v370_v1, %v127_v33  ;;  %v131_v41 = vstv %s394_s26  ;;  %s448_s13 = sld [smem:[#allocation3 + $0x88]]  ;;  %s456_s15 = sld [smem:[#allocation3 + $0x9]] }
  0x36   :  { %v91_v43 = vmul.f32 %v90_v20, %v88_v35  ;;  %v117_v46 = vadd.f32 %v116_v31, %v114_v38  ;;  %v140_v48 = vmul.f32 %v139_v45, %v363_v0  ;;  %v142_v49 = vstv %s406_s28  ;;  %s454_s14 = sld [smem:[#allocation5 + $0x8]]  ;;  %s462_s16 = sld [smem:[#allocation7 + $0x7]] }
  0x37   :  { %v77_v42 = vadd.f32 %v76_v34, %v61_v10  ;;  %v103_v44 = vmax.f32 %v102_v36, 0.0  ;;  %v129_v47 = vadd.f32 %v128_v40, %v125_v37  ;;  %v135_v52 = vstv %s410_s4  ;;  %s464_s17 = sld [smem:[#allocation3 + $0x89]]  ;;  %s470_s18 = sld [smem:[#allocation7 + $0x8]] }
  0x38   :  { %v143_v53 = vmul.f32 %v370_v1, %v142_v49  ;;  %v118_v54 = vmax.f32 %v117_v46, 0.0  ;;  %v146_v56 = vstv %s416_s29  ;;  %v154_v57 = vstv %s418_s30  ;;  %s472_s19 = sld [smem:[#allocation5 + $0x9]] }
  0x39   :  { %v92_v50 = vadd.f32 %v91_v43, %v77_v42  ;;  %v106_v51 = vmul.f32 %v105_v23, %v103_v44  ;;  %v132_v55 = vadd.f32 %v131_v41, %v129_v47  ;;  %v155_v60 = vmul.f32 %v154_v57, %v363_v0  ;;  %s263_s20 = sld [smem:[#allocation7 + $0x9]] }
  0x3a   :  { %v144_v59 = vadd.f32 %v143_v53, %v140_v48  ;;  %v157_v61 = vstv %s421_s6  ;;  %v121_v62 = vmul.f32 %v120_v39, %v118_v54  ;;  %v150_v2 = vstv %s427_s7 }
  0x3b   :  { %v107_v58 = vadd.f32 %v106_v51, %v92_v50  ;;  %v133_v63 = vmax.f32 %v132_v55, 0.0  ;;  %v158_v3 = vmul.f32 %v370_v1, %v157_v61  ;;  %v161_v5 = vstv %s429_s8 }
  0x3c   :  { %v147_v4 = vadd.f32 %v146_v56, %v144_v59  ;;  %v169_v6 = vstv %s432_s3  ;;  %v172_v7 = vstv %s434_s9  ;;  %v165_v13 = vstv %s440_s10 }
  0x3d   :  { %v122_v8 = vadd.f32 %v121_v62, %v107_v58  ;;  %v136_v9 = vmul.f32 %v135_v52, %v133_v63  ;;  %v159_v10 = vadd.f32 %v158_v3, %v155_v60  ;;  %v170_v11 = vmul.f32 %v169_v6, %v363_v0 }
  0x3e   :  { %v148_v12 = vmax.f32 %v147_v4, 0.0  ;;  %v173_v14 = vmul.f32 %v370_v1, %v172_v7  ;;  %v176_v15 = vstv %s442_s11  ;;  %v184_v18 = vstv %s446_s12 }
  0x3f   :  { %v137_v16 = vadd.f32 %v136_v9, %v122_v8  ;;  %v162_v17 = vadd.f32 %v161_v5, %v159_v10  ;;  %v187_v19 = vstv %s448_s13  ;;  %v185_v22 = vmul.f32 %v184_v18, %v363_v0 }
  0x40   :  { %v151_v20 = vmul.f32 %v150_v2, %v148_v12  ;;  %v174_v21 = vadd.f32 %v173_v14, %v170_v11  ;;  %v188_v23 = vmul.f32 %v370_v1, %v187_v19  ;;  %v191_v25 = vstv %s454_s14 }
  0x41   :  { %v163_v24 = vmax.f32 %v162_v17, 0.0  ;;  %v199_v26 = vstv %s456_s15  ;;  %v180_v32 = vstv %s462_s16  ;;  %v202_v33 = vstv %s464_s17 }
  0x42   :  { %v152_v27 = vadd.f32 %v151_v20, %v137_v16  ;;  %v177_v28 = vadd.f32 %v176_v15, %v174_v21  ;;  %v189_v29 = vadd.f32 %v188_v23, %v185_v22  ;;  %v200_v30 = vmul.f32 %v199_v26, %v363_v0 }
  0x43   :  { %v166_v31 = vmul.f32 %v165_v13, %v163_v24  ;;  %v203_v36 = vmul.f32 %v370_v1, %v202_v33  ;;  %v195_v38 = vstv %s470_s18  ;;  %v206_v39 = vstv %s472_s19 }
  0x44   :  { %v178_v34 = vmax.f32 %v177_v28, 0.0  ;;  %v192_v35 = vadd.f32 %v191_v25, %v189_v29  ;;  %v210_v46 = vstv %s263_s20 }
  0x45   :  { %v167_v37 = vadd.f32 %v166_v31, %v152_v27  ;;  %v204_v42 = vadd.f32 %v203_v36, %v200_v30 }
  0x46   :  { %v181_v40 = vmul.f32 %v180_v32, %v178_v34  ;;  %v193_v41 = vmax.f32 %v192_v35, 0.0 }
  0x47   :  { %v207_v45 = vadd.f32 %v206_v39, %v204_v42 }
  0x48   :  { %v182_v43 = vadd.f32 %v181_v40, %v167_v37  ;;  %v196_v44 = vmul.f32 %v195_v38, %v193_v41 }
  0x49   :  { %v208_v48 = vmax.f32 %v207_v45, 0.0 }
  0x4a   :  { %v197_v47 = vadd.f32 %v196_v44, %v182_v43 }
  0x4b   :  { %v211_v0 = vmul.f32 %v210_v46, %v208_v48 }
  0x4d   :  { %v212_v49 = vadd.f32 %v211_v0, %v197_v47 }
  0x4f   :  { %v264_v50 = vmul.f32 -1.442695, %v212_v49 }
  0x51   :  { %268 = vpow2.f32 %v264_v50 }
  0x5b   :  { %v269_v51 = vpop.eup %268 }
  0x5c   :  { %v216_v52 = vadd.f32 1.0, %v269_v51 }
  0x5e   :  { %270 = vrcp.f32 %v216_v52 }
  0x68   :  { %v271_v1 = vpop.eup %270 }
  0x69   :  { %219 = vst [vmem:[%s497_s5] sm:$0x1] %v271_v1 }
  0x6a   :  { %224 = vsyncpa [#allocation4], 1 }
  0x6b   :  { %225 = vsyncpa [#allocation6], 1 }

</bundles_post_ra>
